<compile_context>
chip_gen: v7x
topology: tpu7x:2x2x1
jax: 0.10.0
libtpu: 0.0.40
codegen_flags: <defaults>
</compile_context>

<pallas_src>
import jax
import jax.numpy as jnp
from jax.experimental import pallas as pl
from jax.experimental.pallas import tpu as pltpu


def _round_up(x: int, m: int) -> int:
    return (x + m - 1) // m * m


def gru_cell_kernel(xt_ref, h_ref, wx3_ref, wh2_ref, whh_ref, b3_ref, out_ref):
    H = h_ref.shape[-1]  # padded hidden size (multiple of 128)

    h_f32 = h_ref[...]                         # f32, used for the blend
    xt_bf = xt_ref[...].astype(jnp.bfloat16)   # bf16 matmul inputs
    h_bf = h_f32.astype(jnp.bfloat16)

    # One fused matmul for the x-side of all three gates (+ all biases).
    xw = jnp.dot(xt_bf, wx3_ref[...], preferred_element_type=jnp.float32)
    xw = xw + b3_ref[...]
    # One fused matmul for the h-side of z and r.
    hw = jnp.dot(h_bf, wh2_ref[...], preferred_element_type=jnp.float32)

    z = jax.nn.sigmoid(xw[:, 0:H] + hw[:, 0:H])
    r = jax.nn.sigmoid(xw[:, H:2 * H] + hw[:, H:2 * H])

    rh_bf = (r * h_f32).astype(jnp.bfloat16)
    hbar = jnp.tanh(
        xw[:, 2 * H:3 * H]
        + jnp.dot(rh_bf, whh_ref[...], preferred_element_type=jnp.float32)
    )

    out_ref[...] = (1.0 - z) * h_f32 + z * hbar


def pack_params(raw, n_embd, n_embd2):
    """Pack torch-style (out,in) weights into padded, fused bf16 matrices.

    wx3: (E_pad, 3*H_pad)  columns [z | r | hbar]  (x-side)
    wh2: (H_pad, 2*H_pad)  columns [z | r]         (h-side)
    whh: (H_pad, H_pad)    hbar h-side
    b3 : (1, 3*H_pad)      [bz | br | bh], f32; padded lanes are zero.
    """
    E, H = n_embd, n_embd2
    E_pad = _round_up(E, 128)
    H_pad = _round_up(H, 128)

    def x_part(w):  # (H, E+H) -> (E, H) transposed x slice
        return w[:, :E].T

    def h_part(w):  # (H, E+H) -> (H, H) transposed h slice
        return w[:, E:].T

    wx3 = jnp.zeros((E_pad, 3 * H_pad), jnp.float32)
    wx3 = wx3.at[:E, 0:H].set(x_part(raw["wz"]))
    wx3 = wx3.at[:E, H_pad:H_pad + H].set(x_part(raw["wr"]))
    wx3 = wx3.at[:E, 2 * H_pad:2 * H_pad + H].set(x_part(raw["wh"]))

    wh2 = jnp.zeros((H_pad, 2 * H_pad), jnp.float32)
    wh2 = wh2.at[:H, 0:H].set(h_part(raw["wz"]))
    wh2 = wh2.at[:H, H_pad:H_pad + H].set(h_part(raw["wr"]))

    whh = jnp.zeros((H_pad, H_pad), jnp.float32)
    whh = whh.at[:H, :H].set(h_part(raw["wh"]))

    b3 = jnp.zeros((1, 3 * H_pad), jnp.float32)
    b3 = b3.at[0, 0:H].set(raw["bz"])
    b3 = b3.at[0, H_pad:H_pad + H].set(raw["br"])
    b3 = b3.at[0, 2 * H_pad:2 * H_pad + H].set(raw["bh"])

    return {
        "wx3": wx3.astype(jnp.bfloat16),
        "wh2": wh2.astype(jnp.bfloat16),
        "whh": whh.astype(jnp.bfloat16),
        "b3": b3,  # biases stay f32 (added after f32 accumulation)
        "n_embd": E, "n_embd2": H, "E_pad": E_pad, "H_pad": H_pad,
    }


def gru_cell(xt, hprev, packed, *, block_b=256):
    """Pallas GRU cell. `packed` comes from pack_params()."""
    B, E = xt.shape
    H = hprev.shape[1]
    E_pad, H_pad = packed["E_pad"], packed["H_pad"]

    # Batch tile: sublane-dense (>=8), gridded for large B.
    tb = min(block_b, _round_up(B, 8))
    B_pad = _round_up(B, tb)
    grid = (B_pad // tb,)

    # Zero-pad activations to lane/sublane-dense shapes (plain JAX, outside kernel).
    xt_p = jnp.zeros((B_pad, E_pad), jnp.float32).at[:B, :E].set(xt)
    h_p = jnp.zeros((B_pad, H_pad), jnp.float32).at[:B, :H].set(hprev)

    wx3, wh2, whh, b3 = packed["wx3"], packed["wh2"], packed["whh"], packed["b3"]

    # VMEM budget: resident bf16 weights + double-buffered activation tiles.
    w_bytes = (wx3.size + wh2.size + whh.size) * 2 + b3.size * 4
    act_bytes = 2 * (tb * E_pad + 2 * tb * H_pad) * 4
    vmem_limit = min(max(2 * (w_bytes + act_bytes), 32 * 1024 * 1024),
                     64 * 1024 * 1024)

    flops = (2 * B_pad * E_pad * 3 * H_pad
             + 2 * B_pad * H_pad * 2 * H_pad
             + 2 * B_pad * H_pad * H_pad
             + 10 * B_pad * H_pad)
    cost = pl.CostEstimate(
        flops=flops,
        transcendentals=3 * B_pad * H_pad,
        bytes_accessed=w_bytes + (B_pad * E_pad + 2 * B_pad * H_pad) * 4,
    )

    out_p = pl.pallas_call(
        gru_cell_kernel,
        out_shape=jax.ShapeDtypeStruct((B_pad, H_pad), jnp.float32),
        grid=grid,
        in_specs=[
            pl.BlockSpec((tb, E_pad), lambda i: (i, 0)),          # xt tile
            pl.BlockSpec((tb, H_pad), lambda i: (i, 0)),          # h tile
            pl.BlockSpec((E_pad, 3 * H_pad), lambda i: (0, 0)),   # wx3 (resident)
            pl.BlockSpec((H_pad, 2 * H_pad), lambda i: (0, 0)),   # wh2 (resident)
            pl.BlockSpec((H_pad, H_pad), lambda i: (0, 0)),       # whh (resident)
            pl.BlockSpec((1, 3 * H_pad), lambda i: (0, 0)),       # biases (resident)
        ],
        out_specs=pl.BlockSpec((tb, H_pad), lambda i: (i, 0)),
        compiler_params=pltpu.CompilerParams(
            dimension_semantics=("parallel",),
            vmem_limit_bytes=int(vmem_limit),
        ),
        cost_estimate=cost,
    )(xt_p, h_p, wx3, wh2, whh, b3)

    return out_p[:B, :H]


def init_params(key, n_embd, n_embd2):
    """Deterministic init mimicking nn.Linear: weight (out, in), bias (out,)."""
    d_in = n_embd + n_embd2
    bound = 1.0 / jnp.sqrt(d_in)
    keys = jax.random.split(key, 6)

    def lin(kw, kb):
        w = jax.random.uniform(kw, (n_embd2, d_in), jnp.float32, -bound, bound)
        b = jax.random.uniform(kb, (n_embd2,), jnp.float32, -bound, bound)
        return w, b

    wz, bz = lin(keys[0], keys[1])
    wr, br = lin(keys[2], keys[3])
    wh, bh = lin(keys[4], keys[5])
    return {"wz": wz, "bz": bz, "wr": wr, "br": br, "wh": wh, "bh": bh}


def gru_cell_ref(xt, hprev, raw):
    """Pure-JAX f32 reference mirroring the PyTorch forward exactly."""
    xh = jnp.concatenate([xt, hprev], axis=1)
    r = jax.nn.sigmoid(xh @ raw["wr"].T + raw["br"])
    hprev_reset = r * hprev
    xhr = jnp.concatenate([xt, hprev_reset], axis=1)
    hbar = jnp.tanh(xhr @ raw["wh"].T + raw["bh"])
    z = jax.nn.sigmoid(xh @ raw["wz"].T + raw["bz"])
    return (1.0 - z) * hprev + z * hbar


if __name__ == "__main__":
    batch = 2
    n_embd = 16
    n_embd2 = 32

    key = jax.random.PRNGKey(0)
    k_x, k_h, k_p = jax.random.split(key, 3)
    xt = jax.random.normal(k_x, (batch, n_embd), jnp.float32)
    hprev = jax.random.normal(k_h, (batch, n_embd2), jnp.float32)

    raw = init_params(k_p, n_embd, n_embd2)
    packed = pack_params(raw, n_embd, n_embd2)

    ht = gru_cell(xt, hprev, packed)
    ht = jax.block_until_ready(ht)

    ht_ref = gru_cell_ref(xt, hprev, raw)
    assert ht.shape == (batch, n_embd2)
    # bf16 matmul inputs/weights -> tolerance loosened vs. pure-f32 reference.
    assert jnp.allclose(ht, ht_ref, atol=2e-2, rtol=2e-2), (
        float(jnp.max(jnp.abs(ht - ht_ref))))

    print("KERNEL_OK")
</pallas_src>

<mosaic_0001>
module attributes {stable_mosaic.version = 11 : i64} {
  func.func @gru_cell_kernel(%arg0: i32, %arg1: memref<8x128xf32, #tpu.memory_space<vmem>>, %arg2: memref<8x128xf32, #tpu.memory_space<vmem>>, %arg3: memref<128x384xbf16, #tpu.memory_space<vmem>>, %arg4: memref<128x256xbf16, #tpu.memory_space<vmem>>, %arg5: memref<128x128xbf16, #tpu.memory_space<vmem>>, %arg6: memref<1x384xf32, #tpu.memory_space<vmem>>, %arg7: memref<8x128xf32, #tpu.memory_space<vmem>>) attributes {dimension_semantics = [#tpu.dimension_semantics<parallel>], iteration_bounds = array<i64: 1>, scalar_prefetch = 0 : i64, scratch_operands = 0 : i64, tpu.core_type = #tpu.core_type<tc>, window_params = [{transform_indices = @transform_0, window_bounds = array<i64: 8, 128>}, {transform_indices = @transform_1, window_bounds = array<i64: 8, 128>}, {pipeline_mode = #tpu.pipeline_mode<synchronous>, transform_indices = @transform_2, window_bounds = array<i64: 128, 384>}, {pipeline_mode = #tpu.pipeline_mode<synchronous>, transform_indices = @transform_3, window_bounds = array<i64: 128, 256>}, {pipeline_mode = #tpu.pipeline_mode<synchronous>, transform_indices = @transform_4, window_bounds = array<i64: 128, 128>}, {pipeline_mode = #tpu.pipeline_mode<synchronous>, transform_indices = @transform_5, window_bounds = array<i64: 1, 384>}, {transform_indices = @transform_6, window_bounds = array<i64: 8, 128>}]} {
    %c0 = arith.constant 0 : index
    %c0_0 = arith.constant 0 : index
    %0 = vector.load %arg2[%c0, %c0_0] : memref<8x128xf32, #tpu.memory_space<vmem>>, vector<8x128xf32>
    %c0_1 = arith.constant 0 : index
    %c0_2 = arith.constant 0 : index
    %1 = vector.load %arg1[%c0_1, %c0_2] : memref<8x128xf32, #tpu.memory_space<vmem>>, vector<8x128xf32>
    %2 = arith.truncf %1 : vector<8x128xf32> to vector<8x128xbf16>
    %3 = arith.truncf %0 : vector<8x128xf32> to vector<8x128xbf16>
    %c0_3 = arith.constant 0 : index
    %c0_4 = arith.constant 0 : index
    %4 = vector.load %arg3[%c0_3, %c0_4] : memref<128x384xbf16, #tpu.memory_space<vmem>>, vector<128x384xbf16>
    %cst = arith.constant dense<0.000000e+00> : vector<8x384xf32>
    %5 = tpu.matmul %2, %4, %cst {dimension_numbers = #tpu.dot_dimension_numbers<[1], [0], [0], [1], [0, 0, 1, 1], [], []>} : vector<8x128xbf16>, vector<128x384xbf16>, vector<8x384xf32> -> vector<8x384xf32>
    %c0_5 = arith.constant 0 : index
    %c0_6 = arith.constant 0 : index
    %6 = vector.load %arg6[%c0_5, %c0_6] : memref<1x384xf32, #tpu.memory_space<vmem>>, vector<1x384xf32>
    %7 = vector.broadcast %6 : vector<1x384xf32> to vector<8x384xf32>
    %8 = arith.addf %5, %7 : vector<8x384xf32>
    %c0_7 = arith.constant 0 : index
    %c0_8 = arith.constant 0 : index
    %9 = vector.load %arg4[%c0_7, %c0_8] : memref<128x256xbf16, #tpu.memory_space<vmem>>, vector<128x256xbf16>
    %cst_9 = arith.constant dense<0.000000e+00> : vector<8x256xf32>
    %10 = tpu.matmul %3, %9, %cst_9 {dimension_numbers = #tpu.dot_dimension_numbers<[1], [0], [0], [1], [0, 0, 1, 1], [], []>} : vector<8x128xbf16>, vector<128x256xbf16>, vector<8x256xf32> -> vector<8x256xf32>
    %11 = vector.extract_strided_slice %8 {offsets = [0, 0], sizes = [8, 128], strides = [1, 1]} : vector<8x384xf32> to vector<8x128xf32>
    %12 = vector.extract_strided_slice %10 {offsets = [0, 0], sizes = [8, 128], strides = [1, 1]} : vector<8x256xf32> to vector<8x128xf32>
    %13 = arith.addf %11, %12 : vector<8x128xf32>
    %14 = arith.negf %13 : vector<8x128xf32>
    %15 = math.exp %14 : vector<8x128xf32>
    %cst_10 = arith.constant 1.000000e+00 : f32
    %16 = vector.broadcast %cst_10 : f32 to vector<8x128xf32>
    %17 = arith.addf %16, %15 : vector<8x128xf32>
    %18 = arith.divf %16, %17 : vector<8x128xf32>
    %19 = vector.extract_strided_slice %8 {offsets = [0, 128], sizes = [8, 128], strides = [1, 1]} : vector<8x384xf32> to vector<8x128xf32>
    %20 = vector.extract_strided_slice %10 {offsets = [0, 128], sizes = [8, 128], strides = [1, 1]} : vector<8x256xf32> to vector<8x128xf32>
    %21 = arith.addf %19, %20 : vector<8x128xf32>
    %22 = arith.negf %21 : vector<8x128xf32>
    %23 = math.exp %22 : vector<8x128xf32>
    %cst_11 = arith.constant 1.000000e+00 : f32
    %24 = vector.broadcast %cst_11 : f32 to vector<8x128xf32>
    %25 = arith.addf %24, %23 : vector<8x128xf32>
    %26 = arith.divf %24, %25 : vector<8x128xf32>
    %27 = arith.mulf %26, %0 : vector<8x128xf32>
    %28 = arith.truncf %27 : vector<8x128xf32> to vector<8x128xbf16>
    %29 = vector.extract_strided_slice %8 {offsets = [0, 256], sizes = [8, 128], strides = [1, 1]} : vector<8x384xf32> to vector<8x128xf32>
    %c0_12 = arith.constant 0 : index
    %c0_13 = arith.constant 0 : index
    %30 = vector.load %arg5[%c0_12, %c0_13] : memref<128x128xbf16, #tpu.memory_space<vmem>>, vector<128x128xbf16>
    %cst_14 = arith.constant dense<0.000000e+00> : vector<8x128xf32>
    %31 = tpu.matmul %28, %30, %cst_14 {dimension_numbers = #tpu.dot_dimension_numbers<[1], [0], [0], [1], [0, 0, 1, 1], [], []>} : vector<8x128xbf16>, vector<128x128xbf16>, vector<8x128xf32> -> vector<8x128xf32>
    %32 = arith.addf %29, %31 : vector<8x128xf32>
    %33 = math.tanh %32 : vector<8x128xf32>
    %cst_15 = arith.constant 1.000000e+00 : f32
    %34 = vector.broadcast %cst_15 : f32 to vector<8x128xf32>
    %35 = arith.subf %34, %18 : vector<8x128xf32>
    %36 = arith.mulf %35, %0 : vector<8x128xf32>
    %37 = arith.mulf %18, %33 : vector<8x128xf32>
    %38 = arith.addf %36, %37 : vector<8x128xf32>
    %c0_16 = arith.constant 0 : index
    %c0_17 = arith.constant 0 : index
    %39 = vector.load %arg7[%c0_16, %c0_17] : memref<8x128xf32, #tpu.memory_space<vmem>>, vector<8x128xf32>
    tpu.vector_store %arg7[%c0_16, %c0_17], %38 {strides = array<i32>} : memref<8x128xf32, #tpu.memory_space<vmem>>, vector<8x128xf32>,
    return
  }
  func.func @transform_0(%arg0: i32) -> (i32, i32) {
    %c0_i32 = arith.constant 0 : i32
    %c0_i32_0 = arith.constant 0 : i32
    return %arg0, %c0_i32 : i32, i32
  }
  func.func @transform_1(%arg0: i32) -> (i32, i32) {
    %c0_i32 = arith.constant 0 : i32
    %c0_i32_0 = arith.constant 0 : i32
    return %arg0, %c0_i32 : i32, i32
  }
  func.func @transform_2(%arg0: i32) -> (i32, i32) {
    %c0_i32 = arith.constant 0 : i32
    %c0_i32_0 = arith.constant 0 : i32
    %c0_i32_1 = arith.constant 0 : i32
    return %c0_i32, %c0_i32_0 : i32, i32
  }
  func.func @transform_3(%arg0: i32) -> (i32, i32) {
    %c0_i32 = arith.constant 0 : i32
    %c0_i32_0 = arith.constant 0 : i32
    %c0_i32_1 = arith.constant 0 : i32
    return %c0_i32, %c0_i32_0 : i32, i32
  }
  func.func @transform_4(%arg0: i32) -> (i32, i32) {
    %c0_i32 = arith.constant 0 : i32
    %c0_i32_0 = arith.constant 0 : i32
    %c0_i32_1 = arith.constant 0 : i32
    return %c0_i32, %c0_i32_0 : i32, i32
  }
  func.func @transform_5(%arg0: i32) -> (i32, i32) {
    %c0_i32 = arith.constant 0 : i32
    %c0_i32_0 = arith.constant 0 : i32
    %c0_i32_1 = arith.constant 0 : i32
    return %c0_i32, %c0_i32_0 : i32, i32
  }
  func.func @transform_6(%arg0: i32) -> (i32, i32) {
    %c0_i32 = arith.constant 0 : i32
    %c0_i32_0 = arith.constant 0 : i32
    return %arg0, %c0_i32 : i32, i32
  }
}

</mosaic_0001>

<bundles_post_ra>
// kernel: tpu_custom_call.1
= control target key start
LH: loop header
LB: loop body
LE: loop exit
PB: predicated region body
PF: predicated region fallthrough
CT: control target
= control target key end

     0   :  { %11 = vsyncpa [#allocation3], 0  ;;  %s1143_s0 = inlined_call_operand.hbm [shape: f32[8,128], index: 0, kind: input, shape index: {}]   ;;  %s1144_s1 = inlined_call_operand.hbm [shape: f32[8,128], index: 1, kind: input, shape index: {}]   ;;  %s1145_s2 = inlined_call_operand.hbm [shape: bf16[128,384], index: 2, kind: input, shape index: {}]   ;;  %s1146_s3 = inlined_call_operand.hbm [shape: bf16[128,256], index: 3, kind: input, shape index: {}]   ;;  %s1147_s4 = inlined_call_operand.hbm [shape: bf16[128,128], index: 4, kind: input, shape index: {}]   ;;  %s1148_s5 = inlined_call_operand.vmem [shape: f32[1,384], index: 5, kind: input, shape index: {}]   ;;  %s1149_s6 = inlined_call_operand.hbm [shape: f32[8,128], index: 6, kind: output, shape index: {}]  }
   0x1   :  { %12 = vsyncpa [#allocation6], 0 }
   0x2   :  { %13 = vsyncpa [#allocation9], 0 }
   0x3   :  { %14 = vsyncpa [#allocation4], 0  ;;  %s980_s21 = smov [#allocation5]   ;;  %s981_s23 = smov [#allocation8]  }
   0x4   :  { %s31_s22 = sshll.u32 %s980_s21, 4  ;;  %s52_s24 = sshll.u32 %s981_s23, 4  ;;  %s32_s22 = int_to_ptr.vmem [resolvable:$true] %s31_s22  ;;  %s1030_s24 = int_to_ptr.vmem [resolvable:$true] %s52_s24 }
   0x5   :  { %s840_s27 = scalar_lea.hbm %s1144_s1, 128 }
   0x6   :  { %p841_p0 = scmp.ne.s32.totalorder %s1144_s1, %s840_s27  ;;  %p844_p1 = scmp.lt.u32.totalorder %s840_s27, %s1144_s1 }
   0x8   :  { %p846_p2 = pnand %p844_p1, %p841_p0 }
   0xa   :  { %849 = shalt.err (!%p846_p2)
}
   0xb   :  { %s850_s8 = scalar_lea.vmem %s32_s22, 128  ;;  %p855_p4 = scmp.lt.s32.totalorder %s32_s22, %s32_s22 }
   0xc   :  { %p851_p3 = scmp.ne.s32.totalorder %s32_s22, %s850_s8  ;;  %p856_p5 = scmp.lt.s32.totalorder %s850_s8, %s850_s8 }
   0xe   :  { %p857_p6 = por %p856_p5, %p855_p4 }
  0x10   :  { %p858_p7 = pnand %p857_p6, %p851_p3 }
  0x12   :  { %861 = shalt.err (!%p858_p7)
}
  0x13   :  { %34 = dma.hbm_to_vmem [thread:$0]  %s1144_s1, 128, %s32_s22, [#allocation6]  }
  0x14   :  { %s862_s13 = scalar_lea.hbm %s1146_s3, 2048 }
  0x15   :  { %p863_p8 = scmp.ne.s32.totalorder %s1146_s3, %s862_s13  ;;  %p866_p9 = scmp.lt.u32.totalorder %s862_s13, %s1146_s3 }
  0x17   :  { %p868_p10 = pnand %p866_p9, %p863_p8 }
  0x19   :  { %871 = shalt.err (!%p868_p10)
}
  0x1a   :  { %s872_s18 = scalar_lea.vmem %s1030_s24, 2048  ;;  %p877_p12 = scmp.lt.s32.totalorder %s1030_s24, %s1030_s24 }
  0x1b   :  { %p873_p11 = scmp.ne.s32.totalorder %s1030_s24, %s872_s18  ;;  %p878_p13 = scmp.lt.s32.totalorder %s872_s18, %s872_s18 }
  0x1d   :  { %p879_p0 = por %p878_p13, %p877_p12 }
  0x1f   :  { %p880_p1 = pnand %p879_p0, %p873_p11 }
  0x21   :  { %883 = shalt.err (!%p880_p1)
}
  0x22   :  { %s982_s1 = smov 128   ;;  %s983_s19 = smov 8  }
  0x23   :  { %58 = dma.hbm_to_vmem [thread:$0]  %s1146_s3, 2048, %s1030_s24, [#allocation9], %s982_s1, %s982_s1, %s983_s19  }
  0x24   :  { %s984_s22 = smov [#allocation2]   ;;  %s985_s25 = smov [#allocation7]  }
  0x25   :  { %s21_s23 = sshll.u32 %s984_s22, 4  ;;  %s40_s26 = sshll.u32 %s985_s25, 4  ;;  %s22_s23 = int_to_ptr.vmem [resolvable:$true] %s21_s23  ;;  %s1061_s26 = int_to_ptr.vmem [resolvable:$true] %s40_s26 }
  0x26   :  { %s884_s29 = scalar_lea.hbm %s1143_s0, 128 }
  0x27   :  { %p885_p2 = scmp.ne.s32.totalorder %s1143_s0, %s884_s29  ;;  %p888_p3 = scmp.lt.u32.totalorder %s884_s29, %s1143_s0 }
  0x29   :  { %p890_p4 = pnand %p888_p3, %p885_p2 }
  0x2b   :  { %893 = shalt.err (!%p890_p4)
}
  0x2c   :  { %s894_s3 = scalar_lea.vmem %s22_s23, 128  ;;  %p899_p6 = scmp.lt.s32.totalorder %s22_s23, %s22_s23 }
  0x2d   :  { %p895_p5 = scmp.ne.s32.totalorder %s22_s23, %s894_s3  ;;  %p900_p7 = scmp.lt.s32.totalorder %s894_s3, %s894_s3 }
  0x2f   :  { %p901_p8 = por %p900_p7, %p899_p6 }
  0x31   :  { %p902_p9 = pnand %p901_p8, %p895_p5 }
  0x33   :  { %905 = shalt.err (!%p902_p9)
}
  0x34   :  { %24 = dma.hbm_to_vmem [thread:$0]  %s1143_s0, 128, %s22_s23, [#allocation3]  }
  0x35   :  { %s906_s13 = scalar_lea.hbm %s1145_s2, 3072 }
  0x36   :  { %p907_p10 = scmp.ne.s32.totalorder %s1145_s2, %s906_s13  ;;  %p910_p11 = scmp.lt.u32.totalorder %s906_s13, %s1145_s2 }
  0x38   :  { %p912_p12 = pnand %p910_p11, %p907_p10 }
  0x3a   :  { %915 = shalt.err (!%p912_p12)
}
  0x3b   :  { %s916_s18 = scalar_lea.vmem %s1061_s26, 3072  ;;  %p921_p0 = scmp.lt.s32.totalorder %s1061_s26, %s1061_s26 }
  0x3c   :  { %p917_p13 = scmp.ne.s32.totalorder %s1061_s26, %s916_s18  ;;  %p922_p1 = scmp.lt.s32.totalorder %s916_s18, %s916_s18 }
  0x3e   :  { %p923_p2 = por %p922_p1, %p921_p0 }
  0x40   :  { %p924_p3 = pnand %p923_p2, %p917_p13 }
  0x42   :  { %927 = shalt.err (!%p924_p3)
}
  0x43   :  { %s986_s0 = smov 192   ;;  %s987_s1 = smov 12  }
  0x44   :  { %46 = dma.hbm_to_vmem [thread:$0]  %s1145_s2, 3072, %s1061_s26, [#allocation6], %s986_s0, %s986_s0, %s987_s1  }
  0x45   :  { %s988_s21 = smov [#allocation10]   ;;  %s928_s27 = scalar_lea.hbm %s1147_s4, 1024 }
  0x46   :  { %s64_s22 = sshll.u32 %s988_s21, 4  ;;  %p929_p4 = scmp.ne.s32.totalorder %s1147_s4, %s928_s27  ;;  %s65_s22 = int_to_ptr.vmem [resolvable:$true] %s64_s22 }
  0x47   :  { %p932_p5 = scmp.lt.u32.totalorder %s928_s27, %s1147_s4 }
  0x49   :  { %p934_p6 = pnand %p932_p5, %p929_p4 }
  0x4b   :  { %937 = shalt.err (!%p934_p6)
}
  0x4c   :  { %s938_s8 = scalar_lea.vmem %s65_s22, 1024  ;;  %p943_p8 = scmp.lt.s32.totalorder %s65_s22, %s65_s22 }
  0x4d   :  { %p939_p7 = scmp.ne.s32.totalorder %s65_s22, %s938_s8  ;;  %p944_p9 = scmp.lt.s32.totalorder %s938_s8, %s938_s8 }
  0x4f   :  { %p945_p10 = por %p944_p9, %p943_p8 }
  0x51   :  { %p946_p11 = pnand %p945_p10, %p939_p7 }
  0x53   :  { %949 = shalt.err (!%p946_p11)
}
  0x54   :  { %s989_s2 = smov 64   ;;  %s990_s26 = smov 4  }
  0x55   :  { %70 = dma.hbm_to_vmem [thread:$0]  %s1147_s4, 1024, %s65_s22, [#allocation9], %s989_s2, %s989_s2, %s990_s26  }
  0x56   :  { %972 = dma.done.wait [#allocation3], 128  }
  0x57   :  { %973 = vsyncadd [#allocation3], 4294967168 }
  0x58   :  { %974 = dma.done.wait [#allocation6], 3200  }
  0x59   :  { %975 = vsyncadd [#allocation6], 4294964096 }
  0x5a   :  { %976 = dma.done.wait [#allocation9], 3072  }
  0x5b   :  { %977 = vsyncadd [#allocation9], 4294964224  ;;  %v991_v0 = vmov 0   ;;  %v992_v1 = vmov 0.0   ;;  %v766_v2 = vld [vmem:[#allocation7 + $0x4] ss:$12 sps:$4 sm:$0xff]   ;;  %v127_v54 = vlaneseq }
  0x5c   :  { %302 = vmatprep.mubr.bf16.mxu0 %v991_v0  ;;  %700 = vmatprep.subr.bf16.mxu1 %v992_v1  ;;  %v768_v3 = vld [vmem:[#allocation7] ss:$12 sps:$4 sm:$0xff]   ;;  %v769_v4 = vld [vmem:[#allocation7 + $0x1c] ss:$12 sps:$4 sm:$0xff]   ;;  %v771_v5 = vld [vmem:[#allocation7 + $0x18] ss:$12 sps:$4 sm:$0xff]  }
  0x5d   :  { %270 = vmatprep.subr.bf16.mxu0 %v766_v2  ;;  %v772_v6 = vld [vmem:[#allocation7 + $0x34] ss:$12 sps:$4 sm:$0xff]   ;;  %v774_v7 = vld [vmem:[#allocation7 + $0x30] ss:$12 sps:$4 sm:$0xff]   ;;  %v775_v8 = vld [vmem:[#allocation7 + $0x4c] ss:$12 sps:$4 sm:$0xff]  }
  0x5e   :  { %271 = vmatpush1.bf16.msra.mxu0 %v768_v3  ;;  %v777_v9 = vld [vmem:[#allocation7 + $0x48] ss:$12 sps:$4 sm:$0xff]   ;;  %v778_v10 = vld [vmem:[#allocation7 + $0x64] ss:$12 sps:$4 sm:$0xff]   ;;  %v780_v11 = vld [vmem:[#allocation7 + $0x60] ss:$12 sps:$4 sm:$0xff]  }
  0x5f   :  { %272 = vmatprep.subr.bf16.mxu0 %v769_v4  ;;  %v781_v12 = vld [vmem:[#allocation7 + $0x7c] ss:$12 sps:$4 sm:$0xff]   ;;  %v783_v13 = vld [vmem:[#allocation7 + $0x78] ss:$12 sps:$4 sm:$0xff]   ;;  %v784_v14 = vld [vmem:[#allocation7 + $0x94] ss:$12 sps:$4 sm:$0xff]  }
  0x60   :  { %v786_v15 = vld [vmem:[#allocation7 + $0x90] ss:$12 sps:$4 sm:$0xff]   ;;  %v814_v16 = vld [vmem:[#allocation7 + $0x8] ss:$12 sps:$4 sm:$0xff]   ;;  %v787_v17 = vld [vmem:[#allocation7 + $0xac] ss:$12 sps:$4 sm:$0xff]  }
  0x61   :  { %701 = vmatpush3.bf16.msra.mxu1 %v814_v16  ;;  %v815_v18 = vld [vmem:[#allocation7 + $0x20] ss:$12 sps:$4 sm:$0xff]   ;;  %v789_v19 = vld [vmem:[#allocation7 + $0xa8] ss:$12 sps:$4 sm:$0xff]   ;;  %v816_v22 = vld [vmem:[#allocation7 + $0x38] ss:$12 sps:$4 sm:$0xff]  }
  0x62   :  { %273 = vmatpush1.bf16.msra.mxu0 %v771_v5  ;;  %702 = vmatprep.subr.bf16.mxu1 %v992_v1  ;;  %v792_v20 = vld [vmem:[#allocation8 + $0x4] ss:$8 sps:$4 sm:$0xff]   ;;  %v90_v21 = vld [vmem:[#allocation2] sm:$0xff]  ;;  %v790_v23 = vld [vmem:[#allocation8] ss:$8 sps:$4 sm:$0xff]   ;;  %vm993_vm0 = vmmov 0  }
  0x63   :  { %274 = vmatprep.subr.bf16.mxu0 %v772_v6  ;;  %v91_v24 = vpack.c.bf16 %v90_v21, %v90_v21  ;;  %v795_v25 = vld [vmem:[#allocation8 + $0x14] ss:$8 sps:$4 sm:$0xff]   ;;  %v793_v27 = vld [vmem:[#allocation8 + $0x10] ss:$8 sps:$4 sm:$0xff]   ;;  %v798_v28 = vld [vmem:[#allocation8 + $0x24] ss:$8 sps:$4 sm:$0xff]   ;;  %716 = vmatprep.mubr.msk.bf16.mxu1 %vm993_vm0, %v992_v1 }
  0x64   :  { %v817_v26 = vld [vmem:[#allocation7 + $0x50] ss:$12 sps:$4 sm:$0xff]   ;;  %v818_v29 = vld [vmem:[#allocation7 + $0x68] ss:$12 sps:$4 sm:$0xff]   ;;  %v819_v32 = vld [vmem:[#allocation7 + $0x80] ss:$12 sps:$4 sm:$0xff]  }
  0x65   :  { %703 = vmatpush3.bf16.msra.mxu1 %v815_v18  ;;  %v796_v30 = vld [vmem:[#allocation8 + $0x20] ss:$8 sps:$4 sm:$0xff]   ;;  %v801_v31 = vld [vmem:[#allocation8 + $0x34] ss:$8 sps:$4 sm:$0xff]   ;;  %v799_v33 = vld [vmem:[#allocation8 + $0x30] ss:$8 sps:$4 sm:$0xff]  }
  0x66   :  { %275 = vmatpush1.bf16.msra.mxu0 %v774_v7  ;;  %704 = vmatprep.subr.bf16.mxu1 %v992_v1  ;;  %v804_v34 = vld [vmem:[#allocation8 + $0x44] ss:$8 sps:$4 sm:$0xff]   ;;  %v802_v36 = vld [vmem:[#allocation8 + $0x40] ss:$8 sps:$4 sm:$0xff]   ;;  %v807_v37 = vld [vmem:[#allocation8 + $0x54] ss:$8 sps:$4 sm:$0xff]  }
  0x67   :  { %276 = vmatprep.subr.bf16.mxu0 %v775_v8  ;;  %v820_v35 = vld [vmem:[#allocation7 + $0x98] ss:$12 sps:$4 sm:$0xff]   ;;  %v821_v38 = vld [vmem:[#allocation7 + $0xb0] ss:$12 sps:$4 sm:$0xff]   ;;  %v808_v41 = vld [vmem:[#allocation8 + $0x60] ss:$8 sps:$4 sm:$0xff]  }
  0x68   :  { %v805_v39 = vld [vmem:[#allocation8 + $0x50] ss:$8 sps:$4 sm:$0xff]   ;;  %v810_v40 = vld [vmem:[#allocation8 + $0x64] ss:$8 sps:$4 sm:$0xff]   ;;  %v813_v42 = vld [vmem:[#allocation8 + $0x74] ss:$8 sps:$4 sm:$0xff]  }
  0x69   :  { %705 = vmatpush3.bf16.msra.mxu1 %v816_v22  ;;  %v811_v43 = vld [vmem:[#allocation8 + $0x70] ss:$8 sps:$4 sm:$0xff]   ;;  %v822_v46 = vld [vmem:[#allocation10] sm:$0xff]   ;;  %v823_v47 = vld [vmem:[#allocation10 + $0x8] sm:$0xff]   ;;  %v128_v55 = vshrl.u32 %v127_v54, 7 }
  0x6a   :  { %277 = vmatpush1.bf16.msra.mxu0 %v777_v9  ;;  %706 = vmatprep.subr.bf16.mxu1 %v992_v1  ;;  %v1113_v44 = vld [vmem:[#allocation5] sm:$0xff]  ;;  %v824_v48 = vld [vmem:[#allocation10 + $0x10] sm:$0xff]   ;;  %v826_v50 = vld [vmem:[#allocation10 + $0x20] sm:$0xff]  }
  0x6b   :  { %278 = vmatprep.subr.bf16.mxu0 %v778_v10  ;;  %v92_v45 = vpack.c.bf16 %v1113_v44, %v1113_v44  ;;  %v825_v49 = vld [vmem:[#allocation10 + $0x18] sm:$0xff]   ;;  %v827_v51 = vld [vmem:[#allocation10 + $0x28] sm:$0xff]   ;;  %v828_v52 = vld [vmem:[#allocation10 + $0x30] sm:$0xff]   ;;  %v133_v56 = vsub.s32 1, %v128_v55  ;;  %v129_v6 = vsub.s32 0, %v128_v55 }
  0x6c   :  { %v829_v53 = vld [vmem:[#allocation10 + $0x38] sm:$0xff]   ;;  %v125_v57 = vld [vmem:[%s1148_s5] sm:$0x7]  ;;  %s994_s5 = smov [#allocation11]  }
  0x6d   :  { %707 = vmatpush3.bf16.msra.mxu1 %v817_v26  ;;  %v134_v58 = vrot.slane %v125_v57, %v133_v56  ;;  %v130_v7 = vrot.slane %v125_v57, %v129_v6  ;;  %s621_s10 = sshll.u32 %s994_s5, 4  ;;  %s622_s10 = int_to_ptr.vmem [resolvable:$true] %s621_s10 }
  0x6e   :  { %279 = vmatpush1.bf16.msra.mxu0 %v780_v11  ;;  %708 = vmatprep.subr.bf16.mxu1 %v992_v1  ;;  %s950_s11 = scalar_lea.vmem %s622_s10, 128  ;;  %p955_p13 = scmp.lt.s32.totalorder %s622_s10, %s622_s10 }
  0x6f   :  { %280 = vmatprep.subr.bf16.mxu0 %v781_v12  ;;  %v137_v12 = vsub.s32 2, %v128_v55  ;;  %p951_p12 = scmp.ne.s32.totalorder %s622_s10, %s950_s11  ;;  %p956_p0 = scmp.lt.s32.totalorder %s950_s11, %s950_s11 }
  0x71   :  { %709 = vmatpush3.bf16.msra.mxu1 %v818_v29  ;;  %p957_p1 = por %p956_p0, %p955_p13 }
  0x72   :  { %281 = vmatpush1.bf16.msra.mxu0 %v783_v13  ;;  %710 = vmatprep.subr.bf16.mxu1 %v992_v1  ;;  %v138_v13 = vrot.slane %v125_v57, %v137_v12 }
  0x73   :  { %282 = vmatprep.subr.bf16.mxu0 %v784_v14  ;;  %p958_p2 = pnand %p957_p1, %p951_p12 }
  0x75   :  { %711 = vmatpush3.bf16.msra.mxu1 %v819_v32 }
  0x76   :  { %283 = vmatpush1.bf16.msra.mxu0 %v786_v15  ;;  %712 = vmatprep.subr.bf16.mxu1 %v992_v1 }
  0x77   :  { %284 = vmatprep.subr.bf16.mxu0 %v787_v17 }
  0x79   :  { %713 = vmatpush3.bf16.msra.mxu1 %v820_v35 }
  0x7a   :  { %285 = vmatpush1.bf16.msra.mxu0 %v789_v19  ;;  %714 = vmatprep.subr.bf16.mxu1 %v992_v1 }
  0x7b   :  { %447 = vmatprep.subr.bf16.mxu0 %v792_v20 }
  0x7d   :  { %303 = vmatmul.mubr.bf16.vlgmr.msra.gmra.mrb[0].mxu0 %v91_v24  ;;  %715 = vmatpush3.bf16.msra.mxu1 %v821_v38 }
  0x7e   :  { %448 = vmatpush1.bf16.msra.mxu0 %v790_v23  ;;  %479 = vmatprep.mubr.bf16.mxu0 %v991_v0 }
  0x7f   :  { %449 = vmatprep.subr.bf16.mxu0 %v795_v25  ;;  %720 = vmatprep.subr.bf16.mxu1 %v992_v1 }
  0x80   :  { %717 = vmatmul.mubr.bf16.vlgmr.msra.gmra.mrb[0].mxu1 %v91_v24 }
  0x81   :  { %721 = vmatpush3.bf16.msra.mxu1 %v822_v46  ;;  %736 = vmatprep.mubr.msk.bf16.mxu1 %vm993_vm0, %v992_v1 }
  0x82   :  { %450 = vmatpush1.bf16.msra.mxu0 %v793_v27  ;;  %722 = vmatprep.subr.bf16.mxu1 %v992_v1 }
  0x83   :  { %451 = vmatprep.subr.bf16.mxu0 %v798_v28 }
  0x85   :  { %723 = vmatpush3.bf16.msra.mxu1 %v823_v47 }
  0x86   :  { %452 = vmatpush1.bf16.msra.mxu0 %v796_v30  ;;  %724 = vmatprep.subr.bf16.mxu1 %v992_v1 }
  0x87   :  { %453 = vmatprep.subr.bf16.mxu0 %v801_v31 }
  0x89   :  { %725 = vmatpush3.bf16.msra.mxu1 %v824_v48 }
  0x8a   :  { %454 = vmatpush1.bf16.msra.mxu0 %v799_v33  ;;  %726 = vmatprep.subr.bf16.mxu1 %v992_v1 }
  0x8b   :  { %455 = vmatprep.subr.bf16.mxu0 %v804_v34 }
  0x8d   :  { %727 = vmatpush3.bf16.msra.mxu1 %v825_v49 }
  0x8e   :  { %456 = vmatpush1.bf16.msra.mxu0 %v802_v36  ;;  %728 = vmatprep.subr.bf16.mxu1 %v992_v1 }
  0x8f   :  { %457 = vmatprep.subr.bf16.mxu0 %v807_v37 }
  0x91   :  { %729 = vmatpush3.bf16.msra.mxu1 %v826_v50 }
  0x92   :  { %458 = vmatpush1.bf16.msra.mxu0 %v805_v39  ;;  %730 = vmatprep.subr.bf16.mxu1 %v992_v1 }
  0x93   :  { %459 = vmatprep.subr.bf16.mxu0 %v810_v40 }
  0x95   :  { %731 = vmatpush3.bf16.msra.mxu1 %v827_v51 }
  0x96   :  { %460 = vmatpush1.bf16.msra.mxu0 %v808_v41  ;;  %732 = vmatprep.subr.bf16.mxu1 %v992_v1 }
  0x97   :  { %461 = vmatprep.subr.bf16.mxu0 %v813_v42 }
  0x99   :  { %733 = vmatpush3.bf16.msra.mxu1 %v828_v52 }
  0x9a   :  { %462 = vmatpush1.bf16.msra.mxu0 %v811_v43  ;;  %734 = vmatprep.subr.bf16.mxu1 %v992_v1 }
  0x9d   :  { %480 = vmatmul.mubr.bf16.vlgmr.msra.gmra.mrb[0].mxu0 %v92_v45  ;;  %735 = vmatpush3.bf16.msra.mxu1 %v829_v53 }
 0x170   :  { %v481_v59 = vpop.f32.mrb[0].mxu0 }
 0x171   :  { %v483_v60 = vpop.f32.mrb[1].mxu0  ;;  %v740_v8 = vadd.f32 %v481_v59, %v130_v7 }
 0x172   :  { %v741_v61 = vadd.f32 %v483_v60, %v134_v58  ;;  %v485_v62 = vpop.f32.mrb[2].mxu0 }
 0x173   :  { %v486_v63 = vpop.f32.mrb[3].mxu0  ;;  %v672_v9 = vmul.f32 -1.442695, %v740_v8 }
 0x174   :  { %v673_v0 = vmul.f32 -1.442695, %v741_v61 }
 0x176   :  { %830 = vpow2.f32 %v673_v0 }
 0x180   :  { %v831_v2 = vpop.eup %830 }
 0x181   :  { %v499_v3 = vadd.f32 1.0, %v831_v2 }
 0x183   :  { %832 = vrcp.f32 %v499_v3 }
 0x184   :  { %834 = vpow2.f32 %v672_v9 }
 0x18d   :  { %v833_v1 = vpop.eup %832 }
 0x18e   :  { %v502_v4 = vmul.f32 %v833_v1, %v1113_v44  ;;  %v835_v10 = vpop.eup %834 }
 0x18f   :  { %v492_v11 = vadd.f32 1.0, %v835_v10 }
 0x190   :  { %v503_v5 = vpack.c.bf16 %v502_v4, %v502_v4 }
 0x191   :  { %836 = vrcp.f32 %v492_v11 }
 0x192   :  { %737 = vmatmul.mubr.bf16.vlgmr.msra.gmra.mrb[0].mxu1 %v503_v5 }
 0x19b   :  { %v837_v19 = vpop.eup %836 }
 0x19c   :  { %v610_v20 = vsub.f32 1.0, %v837_v19 }
 0x19e   :  { %v611_v22 = vmul.f32 %v610_v20, %v1113_v44 }
 0x265   :  { %v602_v14 = vpop.f32.mrb[0].mxu1 }
 0x266   :  { %v742_v15 = vadd.f32 %v602_v14, %v138_v13  ;;  %v738_v16 = vpop.f32.mrb[1].mxu1 }
 0x267   :  { %v605_v17 = vpop.f32.mrb[2].mxu1 }
 0x268   :  { %838 = vtanh.f32 %v742_v15  ;;  %v739_v18 = vpop.f32.mrb[3].mxu1 }
 0x272   :  { %v839_v21 = vpop.eup %838 }
 0x273   :  { %v612_v23 = vmul.f32 %v839_v21, %v837_v19 }
 0x275   :  { %v613_v24 = vadd.f32 %v612_v23, %v611_v22 }
 0x277   :  { %614 = vst [vmem:[#allocation11] sm:$0xff] %v613_v24 }
 0x278   :  { %961 = shalt.err (!%p958_p2)
}
 0x279   :  { %s962_s14 = scalar_lea.hbm %s1149_s6, 128 }
 0x27a   :  { %p963_p3 = scmp.ne.s32.totalorder %s1149_s6, %s962_s14  ;;  %p966_p4 = scmp.lt.u32.totalorder %s962_s14, %s1149_s6 }
 0x27c   :  { %p968_p5 = pnand %p966_p4, %p963_p3 }
 0x27e   :  { %971 = shalt.err (!%p968_p5)
}
 0x27f   :  { %624 = dma.vmem_to_hbm [thread:$0]  %s622_s10, 128, %s1149_s6, [#allocation4]  }
 0x280   :  { %978 = dma.done.wait [#allocation4], 128  }
 0x281   :  { %979 = vsyncadd [#allocation4], 4294967168 }
 0x282   :  { %628 = vsyncpa [#allocation3], 1 }
 0x283   :  { %629 = vsyncpa [#allocation6], 1 }
 0x284   :  { %630 = vsyncpa [#allocation9], 1 }
 0x285   :  { %631 = vsyncpa [#allocation4], 1 }

</bundles_post_ra>
